<compile_context>
chip_gen: v5e
topology: v5e:2x2
jax: 0.10.0
libtpu: 0.0.40
codegen_flags: <defaults>
</compile_context>

<pallas_src>
import functools
import math

import jax
import jax.numpy as jnp
from jax import lax
from jax.experimental import pallas as pl
from jax.experimental.pallas import tpu as pltpu

LANES = 128
SUBLANES = 8
MAX_TILE_ROWS = 4096     # (4096,128) f32 block = 2 MiB; 2 inputs * 2 buffers = 8 MiB VMEM
NUM_CORE_SPLITS = 2      # leading "parallel" axis: ~2x on dual-TC v7x, harmless on v5e/v6e


def _round_up(x, m):
    return (x + m - 1) // m * m


def _awing_elementwise(y_pred, y, *, alpha, omega, epsilon, theta, use_approx_recip):
    """Elementwise AWing loss (matches AWing.forward before the .mean()).

    Inputs must already be float32.  `use_approx_recip=True` is only valid
    inside a Pallas kernel (uses pl.reciprocal on the EUP).
    """
    r = theta / epsilon                       # compile-time positive constant
    log_r = math.log(r)
    inv_eps = 1.0 / epsilon

    expo = alpha - y
    # r ** expo with a constant base: one exp instead of pow's exp+log+selects.
    r_pow = jnp.exp(expo * log_r)
    one_plus_rpow = 1.0 + r_pow
    if use_approx_recip:
        inv_1p = pl.reciprocal(one_plus_rpow, approx=True)   # EUP approx recip
    else:
        inv_1p = 1.0 / one_plus_rpow
    # r ** (expo - 1) == r_pow / r  -> folded into the constant factor.
    A = (omega / (r * epsilon)) * inv_1p * expo * r_pow
    C = theta * A - omega * jnp.log(one_plus_rpow)

    diff = jnp.abs(y - y_pred)
    # (diff/eps) ** expo as exp(expo * log(diff/eps)); the tiny-clamp keeps
    # diff == 0 on the pow(0, expo > 0) == 0 path (exp(-expo*69) ~ 0).
    # NOTE: deviates from jnp.power only when diff == 0 AND y >= alpha (=2.1),
    # which is outside the intended heatmap regime (y in [0, 1]).
    diff_scaled = jnp.maximum(diff * inv_eps, 1e-30)
    pow_val = jnp.exp(expo * jnp.log(diff_scaled))
    case1 = omega * jnp.log(1.0 + pow_val)
    case2 = A * diff - C
    return jnp.where(diff < theta, case1, case2)


def _awing_partial_sum_kernel(yp_ref, y_ref, out_ref, *,
                              alpha, omega, epsilon, theta, approx_recip,
                              blocks_per_split, num_blocks, valid_rows,
                              needs_mask):
    c = pl.program_id(0)          # core split (parallel)
    i = pl.program_id(1)          # reduction step (arbitrary)

    @pl.when(i == 0)
    def _():
        out_ref[...] = jnp.zeros_like(out_ref)

    yp = yp_ref[...].astype(jnp.float32)      # stream native dtype, upcast in VMEM
    yt = y_ref[...].astype(jnp.float32)
    loss = _awing_elementwise(yp, yt, alpha=alpha, omega=omega,
                              epsilon=epsilon, theta=theta,
                              use_approx_recip=approx_recip)

    def accumulate(vals):
        # Partial-sum into the resident (1,8,128) output block: pure VALU adds,
        # no per-step cross-lane reduce and no sub-128-lane masked store.
        out_ref[...] += vals.reshape(-1, SUBLANES, LANES).sum(axis=0, keepdims=True)

    if not needs_mask:
        # Aligned case: every (c, i) maps to a distinct full block.
        accumulate(loss)
    else:
        g = c * blocks_per_split + i          # global block index
        last = num_blocks - 1
        tile_rows = loss.shape[0]

        @pl.when(g < last)                    # full, valid blocks: unmasked add
        def _():
            accumulate(loss)

        @pl.when(g == last)                   # last real block (possibly ragged)
        def _():
            if valid_rows % tile_rows != 0:
                # Rows past the real extent hold undefined data: select-zero
                # them BEFORE summing (where selects, never multiplies NaNs in).
                row_ids = (lax.broadcasted_iota(jnp.int32, loss.shape, 0)
                           + last * tile_rows)
                accumulate(jnp.where(row_ids < valid_rows, loss, 0.0))
            else:
                accumulate(loss)
        # g > last: padded grid step beyond the real data -> contributes nothing.


def loss_weighted(y_pred, y, M, *, W=10.0, alpha=2.1, omega=14.0,
                  epsilon=1.0, theta=0.5, approx_recip=True,
                  max_tile_rows=MAX_TILE_ROWS):
    """JAX/Pallas equivalent of Loss_weighted.forward(y_pred, y, M)."""
    assert float(theta) > 0.0 and float(epsilon) > 0.0, "theta/epsilon must be > 0"
    assert y.shape == y_pred.shape

    n = y_pred.size
    yp_flat = y_pred.reshape(-1)
    y_flat = y.reshape(-1)

    # Lane-dense kernel prefix (multiple of 128 elements): zero copies when
    # aligned (reshape only).  The <128-element tail is handled in plain jnp,
    # so there is never a full-array pad copy of either input.
    n_main = (n // LANES) * LANES
    loss_sum = jnp.float32(0.0)

    if n_main > 0:
        if n_main == n:
            yp_main, y_main = yp_flat, y_flat
        else:
            yp_main, y_main = yp_flat[:n_main], y_flat[:n_main]
        rows = n_main // LANES
        yp_slab = yp_main.reshape(rows, LANES)
        y_slab = y_main.reshape(rows, LANES)

        # Multiple of 16 so bf16 inputs pack cleanly; rows may still be ragged
        # w.r.t. the tile (masked in-kernel on the last step only).
        tile_rows = min(int(max_tile_rows), _round_up(rows, 16))
        num_blocks = pl.cdiv(rows, tile_rows)
        blocks_per_split = pl.cdiv(num_blocks, NUM_CORE_SPLITS)
        ragged = (rows % tile_rows) != 0
        needs_mask = ragged or (num_blocks % NUM_CORE_SPLITS != 0)

        kernel = functools.partial(
            _awing_partial_sum_kernel,
            alpha=float(alpha), omega=float(omega),
            epsilon=float(epsilon), theta=float(theta),
            approx_recip=bool(approx_recip),
            blocks_per_split=blocks_per_split, num_blocks=num_blocks,
            valid_rows=rows, needs_mask=needs_mask)

        def in_map(c, i):
            # Clamp so padded grid steps (when num_blocks isn't a multiple of
            # NUM_CORE_SPLITS) keep their DMA in bounds; their contribution is
            # skipped inside the kernel.
            return (jnp.minimum(c * blocks_per_split + i, num_blocks - 1), 0)

        in_spec = pl.BlockSpec((tile_rows, LANES), in_map)

        partials = pl.pallas_call(
            kernel,
            out_shape=jax.ShapeDtypeStruct(
                (NUM_CORE_SPLITS, SUBLANES, LANES), jnp.float32),
            grid=(NUM_CORE_SPLITS, blocks_per_split),
            in_specs=[in_spec, in_spec],
            out_specs=pl.BlockSpec((1, SUBLANES, LANES), lambda c, i: (c, 0, 0)),
            compiler_params=pltpu.CompilerParams(
                dimension_semantics=("parallel", "arbitrary")),
        )(yp_slab, y_slab)
        loss_sum = jnp.sum(partials)

    if n_main != n:
        # <128-element tail: plain jnp (exact reciprocal), added to the kernel sum.
        tail_loss = _awing_elementwise(
            yp_flat[n_main:].astype(jnp.float32),
            y_flat[n_main:].astype(jnp.float32),
            alpha=float(alpha), omega=float(omega), epsilon=float(epsilon),
            theta=float(theta), use_approx_recip=False)
        loss_sum = loss_sum + jnp.sum(tail_loss)

    awing_mean = loss_sum / jnp.float32(n)
    # AWing returns a scalar, so (Loss*(W*M+1)).mean() == Loss*(W*mean(M)+1);
    # mean(M) is a one-pass XLA reduction, M never enters the kernel.
    m_mean = jnp.mean(M.astype(jnp.float32))
    return awing_mean * (jnp.float32(W) * m_mean + 1.0)


def _reference(y_pred, y, M, W=10.0, alpha=2.1, omega=14.0, epsilon=1.0, theta=0.5):
    """Pure-jnp transcription of the PyTorch module, for validation."""
    y_pred = y_pred.astype(jnp.float32)
    y = y.astype(jnp.float32)
    M = M.astype(jnp.float32)
    r = theta / epsilon
    A = (omega * (1.0 / (1.0 + r ** (alpha - y))) * (alpha - y)
         * r ** (alpha - y - 1.0) / epsilon)
    C = theta * A - omega * jnp.log(1.0 + r ** (alpha - y))
    diff = jnp.abs(y - y_pred)
    case1 = omega * jnp.log(1.0 + jnp.abs((y - y_pred) / epsilon) ** (alpha - y))
    case2 = A * diff - C
    loss = jnp.where(diff < theta, case1, case2).mean()
    return (loss * (W * M + 1.0)).mean()


if __name__ == "__main__":
    key = jax.random.PRNGKey(0)
    k1, k2, k3 = jax.random.split(key, 3)

    B, C, H, Wd = 2, 4, 16, 16
    y_pred = jax.random.uniform(k1, (B, C, H, Wd), dtype=jnp.float32)
    y = jax.random.uniform(k2, (B, C, H, Wd), dtype=jnp.float32)
    M = (jax.random.uniform(k3, (B, C, H, Wd), dtype=jnp.float32) > 0.5
         ).astype(jnp.float32)

    out = loss_weighted(y_pred, y, M)
    jax.block_until_ready(out)

    ref = _reference(y_pred, y, M)
    jax.block_until_ready(ref)
    # approx=True reciprocal injects ~1e-3 relative error on the |diff|>=theta
    # branch; loose tolerance here, use approx_recip=False for exact validation.
    err = abs(float(out) - float(ref))
    assert err <= 1e-4 + 1e-2 * abs(float(ref)), (float(out), float(ref))

    print("KERNEL_OK")
</pallas_src>

<mosaic_0001>
module attributes {stable_mosaic.version = 11 : i64} {
  func.func @_awing_partial_sum_kernel(%arg0: i32, %arg1: i32, %arg2: memref<16x128xf32, #tpu.memory_space<vmem>>, %arg3: memref<16x128xf32, #tpu.memory_space<vmem>>, %arg4: memref<1x8x128xf32, #tpu.memory_space<vmem>>) attributes {dimension_semantics = [#tpu.dimension_semantics<parallel>, #tpu.dimension_semantics<arbitrary>], iteration_bounds = array<i64: 2, 1>, scalar_prefetch = 0 : i64, scratch_operands = 0 : i64, tpu.core_type = #tpu.core_type<tc>, window_params = [{transform_indices = @transform_0, window_bounds = array<i64: 16, 128>}, {transform_indices = @transform_1, window_bounds = array<i64: 16, 128>}, {transform_indices = @transform_2, window_bounds = array<i64: 1, 8, 128>}]} {
    %c0_i32 = arith.constant 0 : i32
    %0 = arith.cmpi eq, %arg1, %c0_i32 : i32
    %1 = arith.extui %0 : i1 to i32
    %c0_i32_0 = arith.constant 0 : i32
    %2 = arith.cmpi ne, %1, %c0_i32_0 : i32
    scf.if %2 {
      %cst_18 = arith.constant 0.000000e+00 : f32
      %50 = vector.broadcast %cst_18 : f32 to vector<1x8x128xf32>
      %c0_19 = arith.constant 0 : index
      %c0_20 = arith.constant 0 : index
      %c0_21 = arith.constant 0 : index
      %51 = vector.load %arg4[%c0_19, %c0_20, %c0_21] : memref<1x8x128xf32, #tpu.memory_space<vmem>>, vector<1x8x128xf32>
      tpu.vector_store %arg4[%c0_19, %c0_20, %c0_21], %50 {strides = array<i32>} : memref<1x8x128xf32, #tpu.memory_space<vmem>>, vector<1x8x128xf32>,
    } else {
    }
    %c0 = arith.constant 0 : index
    %c0_1 = arith.constant 0 : index
    %3 = vector.load %arg2[%c0, %c0_1] : memref<16x128xf32, #tpu.memory_space<vmem>>, vector<16x128xf32>
    %c0_2 = arith.constant 0 : index
    %c0_3 = arith.constant 0 : index
    %4 = vector.load %arg3[%c0_2, %c0_3] : memref<16x128xf32, #tpu.memory_space<vmem>>, vector<16x128xf32>
    %cst = arith.constant 2.100000e+00 : f32
    %5 = vector.broadcast %cst : f32 to vector<16x128xf32>
    %6 = arith.subf %5, %4 : vector<16x128xf32>
    %cst_4 = arith.constant -0.693147182 : f32
    %7 = vector.broadcast %cst_4 : f32 to vector<16x128xf32>
    %8 = arith.mulf %6, %7 : vector<16x128xf32>
    %9 = math.exp %8 : vector<16x128xf32>
    %cst_5 = arith.constant 1.000000e+00 : f32
    %10 = vector.broadcast %cst_5 : f32 to vector<16x128xf32>
    %11 = arith.addf %10, %9 : vector<16x128xf32>
    %12 = tpu.reciprocal %11 {approx = true} : vector<16x128xf32> -> vector<16x128xf32>
    %cst_6 = arith.constant 2.800000e+01 : f32
    %13 = vector.broadcast %cst_6 : f32 to vector<16x128xf32>
    %14 = arith.mulf %13, %12 : vector<16x128xf32>
    %15 = arith.mulf %14, %6 : vector<16x128xf32>
    %16 = arith.mulf %15, %9 : vector<16x128xf32>
    %cst_7 = arith.constant 5.000000e-01 : f32
    %17 = vector.broadcast %cst_7 : f32 to vector<16x128xf32>
    %18 = arith.mulf %17, %16 : vector<16x128xf32>
    %19 = math.log %11 : vector<16x128xf32>
    %cst_8 = arith.constant 1.400000e+01 : f32
    %20 = vector.broadcast %cst_8 : f32 to vector<16x128xf32>
    %21 = arith.mulf %20, %19 : vector<16x128xf32>
    %22 = arith.subf %18, %21 : vector<16x128xf32>
    %23 = arith.subf %4, %3 : vector<16x128xf32>
    %24 = math.absf %23 : vector<16x128xf32>
    %cst_9 = arith.constant 1.000000e+00 : f32
    %25 = vector.broadcast %cst_9 : f32 to vector<16x128xf32>
    %26 = arith.mulf %24, %25 : vector<16x128xf32>
    %cst_10 = arith.constant 1.000000e-30 : f32
    %27 = vector.broadcast %cst_10 : f32 to vector<16x128xf32>
    %28 = arith.maximumf %26, %27 : vector<16x128xf32>
    %29 = math.log %28 : vector<16x128xf32>
    %30 = arith.mulf %6, %29 : vector<16x128xf32>
    %31 = math.exp %30 : vector<16x128xf32>
    %cst_11 = arith.constant 1.000000e+00 : f32
    %32 = vector.broadcast %cst_11 : f32 to vector<16x128xf32>
    %33 = arith.addf %32, %31 : vector<16x128xf32>
    %34 = math.log %33 : vector<16x128xf32>
    %cst_12 = arith.constant 1.400000e+01 : f32
    %35 = vector.broadcast %cst_12 : f32 to vector<16x128xf32>
    %36 = arith.mulf %35, %34 : vector<16x128xf32>
    %37 = arith.mulf %16, %24 : vector<16x128xf32>
    %38 = arith.subf %37, %22 : vector<16x128xf32>
    %cst_13 = arith.constant 5.000000e-01 : f32
    %39 = vector.broadcast %cst_13 : f32 to vector<16x128xf32>
    %40 = arith.cmpf olt, %24, %39 : vector<16x128xf32>
    %41 = arith.select %40, %36, %38 : vector<16x128xi1>, vector<16x128xf32>
    %c1_i32 = arith.constant 1 : i32
    %42 = arith.muli %arg0, %c1_i32 : i32
    %43 = arith.addi %42, %arg1 : i32
    %c0_i32_14 = arith.constant 0 : i32
    %44 = arith.cmpi slt, %43, %c0_i32_14 : i32
    %45 = arith.extui %44 : i1 to i32
    %c0_i32_15 = arith.constant 0 : i32
    %46 = arith.cmpi ne, %45, %c0_i32_15 : i32
    scf.if %46 {
      %c0_18 = arith.constant 0 : index
      %c0_19 = arith.constant 0 : index
      %c0_20 = arith.constant 0 : index
      %50 = vector.load %arg4[%c0_18, %c0_19, %c0_20] : memref<1x8x128xf32, #tpu.memory_space<vmem>>, vector<1x8x128xf32>
      %51 = vector.shape_cast %41 : vector<16x128xf32> to vector<2x8x128xf32>
      %cst_21 = arith.constant dense<0.000000e+00> : vector<8x128xf32>
      %52 = vector.multi_reduction <add>, %51, %cst_21 [0] : vector<2x8x128xf32> to vector<8x128xf32>
      %53 = vector.shape_cast %52 : vector<8x128xf32> to vector<1x8x128xf32>
      %54 = arith.addf %50, %53 : vector<1x8x128xf32>
      %c0_22 = arith.constant 0 : index
      %c0_23 = arith.constant 0 : index
      %c0_24 = arith.constant 0 : index
      %55 = vector.load %arg4[%c0_22, %c0_23, %c0_24] : memref<1x8x128xf32, #tpu.memory_space<vmem>>, vector<1x8x128xf32>
      tpu.vector_store %arg4[%c0_22, %c0_23, %c0_24], %54 {strides = array<i32>} : memref<1x8x128xf32, #tpu.memory_space<vmem>>, vector<1x8x128xf32>,
    } else {
    }
    %c0_i32_16 = arith.constant 0 : i32
    %47 = arith.cmpi eq, %43, %c0_i32_16 : i32
    %48 = arith.extui %47 : i1 to i32
    %c0_i32_17 = arith.constant 0 : i32
    %49 = arith.cmpi ne, %48, %c0_i32_17 : i32
    scf.if %49 {
      %c0_18 = arith.constant 0 : index
      %c0_19 = arith.constant 0 : index
      %c0_20 = arith.constant 0 : index
      %50 = vector.load %arg4[%c0_18, %c0_19, %c0_20] : memref<1x8x128xf32, #tpu.memory_space<vmem>>, vector<1x8x128xf32>
      %51 = vector.shape_cast %41 : vector<16x128xf32> to vector<2x8x128xf32>
      %cst_21 = arith.constant dense<0.000000e+00> : vector<8x128xf32>
      %52 = vector.multi_reduction <add>, %51, %cst_21 [0] : vector<2x8x128xf32> to vector<8x128xf32>
      %53 = vector.shape_cast %52 : vector<8x128xf32> to vector<1x8x128xf32>
      %54 = arith.addf %50, %53 : vector<1x8x128xf32>
      %c0_22 = arith.constant 0 : index
      %c0_23 = arith.constant 0 : index
      %c0_24 = arith.constant 0 : index
      %55 = vector.load %arg4[%c0_22, %c0_23, %c0_24] : memref<1x8x128xf32, #tpu.memory_space<vmem>>, vector<1x8x128xf32>
      tpu.vector_store %arg4[%c0_22, %c0_23, %c0_24], %54 {strides = array<i32>} : memref<1x8x128xf32, #tpu.memory_space<vmem>>, vector<1x8x128xf32>,
    } else {
    }
    return
  }
  func.func @transform_0(%arg0: i32, %arg1: i32) -> (i32, i32) {
    %c1_i32 = arith.constant 1 : i32
    %0 = arith.muli %arg0, %c1_i32 : i32
    %1 = arith.addi %0, %arg1 : i32
    %c0_i32 = arith.constant 0 : i32
    %2 = arith.minsi %1, %c0_i32 : i32
    %c0_i32_0 = arith.constant 0 : i32
    %c0_i32_1 = arith.constant 0 : i32
    return %2, %c0_i32_0 : i32, i32
  }
  func.func @transform_1(%arg0: i32, %arg1: i32) -> (i32, i32) {
    %c1_i32 = arith.constant 1 : i32
    %0 = arith.muli %arg0, %c1_i32 : i32
    %1 = arith.addi %0, %arg1 : i32
    %c0_i32 = arith.constant 0 : i32
    %2 = arith.minsi %1, %c0_i32 : i32
    %c0_i32_0 = arith.constant 0 : i32
    %c0_i32_1 = arith.constant 0 : i32
    return %2, %c0_i32_0 : i32, i32
  }
  func.func @transform_2(%arg0: i32, %arg1: i32) -> (i32, i32, i32) {
    %c0_i32 = arith.constant 0 : i32
    %c0_i32_0 = arith.constant 0 : i32
    %c0_i32_1 = arith.constant 0 : i32
    return %arg0, %c0_i32, %c0_i32_0 : i32, i32, i32
  }
}

</mosaic_0001>

<bundles_post_ra>
// kernel: tpu_custom_call.1
= control target key start
LH: loop header
LB: loop body
LE: loop exit
PB: predicated region body
PF: predicated region fallthrough
CT: control target
= control target key end

     0   :  { %7 = vsyncpa [#allocation3], 0  ;;  %s968_s0 = inlined_call_operand.hbm [shape: f32[16,128], index: 0, kind: input, shape index: {}]   ;;  %s969_s1 = inlined_call_operand.hbm [shape: f32[16,128], index: 1, kind: input, shape index: {}]   ;;  %s970_s2 = inlined_call_operand.hbm [shape: f32[2,8,128], index: 2, kind: output, shape index: {}]  }
   0x1   :  { %9 = vsyncpa [#allocation3 + $0x1], 0 }
   0x2   :  { %10 = vsyncpa [#allocation6], 0 }
   0x3   :  { %12 = vsyncpa [#allocation6 + $0x1], 0 }
   0x4   :  { %13 = vsyncpa [#allocation4], 0 }
   0x5   :  { %15 = vsyncpa [#allocation4 + $0x1], 0  ;;  %s776_s9 = smov 0   ;;  %s778_s10 = smov 0  }
   0x6   :  { %s780_s11 = smov 0   ;;  %s782_s12 = smov 0  }
   0x7   :  { %s784_s13 = smov 0   ;;  %s786_s14 = smov 0  }
   0x8   :  { %s788_s15 = smov 0   ;;  %s790_s16 = smov 0  }
   0x9 LB: > { %s447_s17 = sadd.s32 4294967295, %s754_s16   ;;  %s448_s18 = sadd.s32 4294967294, %s754_s16   ;;  %s754_s16 = sphi %s790_s16, %s21_s16   ;;  %s750_s15 = sphi %s788_s15, %s982_s15   ;;  %s746_s14 = sphi %s786_s14, %s981_s14   ;;  %s742_s13 = sphi %s784_s13, %s958_s13   ;;  %s738_s12 = sphi %s782_s12, %s980_s12   ;;  %s734_s11 = sphi %s780_s11, %s979_s11   ;;  %s730_s10 = sphi %s778_s10, %s978_s10   ;;  %s726_s9 = sphi %s776_s9, %s977_s9  }
   0xa   : > { %s33_s19 = sadd.s32 1, %s750_s15  ;;  %p723_p1 = scmp.ne.s32.totalorder %s742_s13, 0 }
   0xb   : > { %p35_p0 = scmp.ge.s32.totalorder %s33_s19, 2  ;;  %p54_p2 = scmp.eq.s32.totalorder %s754_s16, 0 }
   0xc   : > { %p59_p3 = scmp.ne.s32.totalorder %s742_s13, %s738_s12  ;;  %p60_p5 = scmp.eq.s32.totalorder %s447_s17, 0 }
   0xd   : > { %s984_s19 = smov (%p35_p0, %s33_s19), 0  ;;  %p822_p4 = por %p723_p1, %p54_p2 }
   0xe   : > { %p826_p6 = por %p60_p5, %p59_p3  ;;  %s101_s22 = ssub.s32 %s750_s15, %s984_s19 }
   0xf   : > { %p102_p7 = scmp.eq.s32.totalorder %s101_s22, 0  ;;  %s104_s23 = sadd.s32 1, %s734_s11 }
  0x10   : > { %p114_p8 = scmp.ne.s32.totalorder %s734_s11, %s730_s10  ;;  %p115_p9 = scmp.eq.s32.totalorder %s447_s17, 1 }
  0x11   : > { %s834_s24 = scalar_select %p102_p7, %s734_s11, %s104_s23  }
  0x12   : > { %p120_p10 = scmp.ne.s32.totalorder %s730_s10, %s726_s9  ;;  %p121_p11 = scmp.eq.s32.totalorder %s448_s18, 1 }
  0x13   : > { %p840_p12 = por %p115_p9, %p114_p8  ;;  %p450_p13 = scmp.ge.s32.totalorder %s754_s16, 2 }
  0x14   : > { %p845_p0 = por %p121_p11, %p120_p10  ;;  %p486_p1 = scmp.lt.s32.totalorder %s754_s16, 2 }
  0x15   : > { %s154_s29 = sshll.u32 %s968_s0, 4  ;;  %s756_s30 = smov [#allocation2]   ;;  %s155_s29 = int_to_ptr.hbm [resolvable:$true] %s154_s29 }
  0x16   : > { %s156_s3 = sshll.u32 %s756_s30, 4  ;;  %p855_p2 = pnand %p486_p1, %p822_p4  ;;  %s157_s3 = int_to_ptr.vmem [resolvable:$true] %s156_s3 }
  0x17   : > { %p457_p3 = scmp.ge.s32.totalorder %s754_s16, 1  ;;  %p189_p5 = scmp.lt.s32.totalorder %s754_s16, 3 }
  0x18   : > { %s587_s5 = sshra.s32 %s155_s29, 4  ;;  %p591_p8 = pneg %p855_p2  ;;  %s588_s5 = int_to_ptr.hbm [resolvable:$true] %s587_s5 }
  0x19   : > { %s589_s6 = scalar_lea.hbm %s588_s5, 16  ;;  %s594_s12 = scalar_lea.hbm %s968_s0, 16 }
  0x1a   : > { %p590_p7 = scmp.ne.s32.totalorder %s588_s5, %s589_s6  ;;  %p596_p4 = scmp.lt.s32.totalorder %s594_s12, %s589_s6 }
  0x1c   : > { %p592_p9 = pnand %p591_p8, %p590_p7 }
  0x1e   : > { %p593_p10 = pneg %p592_p9 }
  0x20   : > { %p598_p11 = pnand %p596_p4, %p593_p10 }
  0x22   : > { %601 = shalt.err (!%p598_p11)
}
  0x23   : > { %s757_s17 = smov 128   ;;  %s758_s18 = smov 8  }
  0x24   : > { %478 = dma.hbm_to_vmem [thread:$0]  (!%p855_p2), %s155_s29, 256, %s157_s3, [#allocation3], %s757_s17, %s757_s17, %s758_s18  }
  0x25   : > { %p875_p1 = pnand %p457_p3, %p189_p5  ;;  %s179_s27 = sshll.u32 %s969_s1, 4  ;;  %s180_s27 = int_to_ptr.hbm [resolvable:$true] %s179_s27 }
  0x26   : > { %s759_s28 = smov [#allocation5]   ;;  %s617_s5 = sshra.s32 %s180_s27, 4  ;;  %s618_s5 = int_to_ptr.hbm [resolvable:$true] %s617_s5 }
  0x27   : > { %s181_s30 = sshll.u32 %s759_s28, 4  ;;  %s619_s6 = scalar_lea.hbm %s618_s5, 16  ;;  %s182_s30 = int_to_ptr.vmem [resolvable:$true] %s181_s30 }
  0x28   : > { %p620_p7 = scmp.ne.s32.totalorder %s618_s5, %s619_s6  ;;  %s624_s7 = scalar_lea.hbm %s969_s1, 16 }
  0x29   : > { %p626_p3 = scmp.lt.s32.totalorder %s624_s7, %s619_s6 }
  0x2a   : > { %p622_p9 = pnand %p620_p7, %p591_p8 }
  0x2c   : > { %p623_p10 = pneg %p622_p9 }
  0x2e   : > { %p628_p5 = pnand %p626_p3, %p623_p10 }
  0x30   : > { %631 = shalt.err (!%p628_p5)
}
  0x31   : > { %481 = dma.hbm_to_vmem [thread:$0]  (!%p855_p2), %s180_s27, 256, %s182_s30, [#allocation6], %s757_s17, %s757_s17, %s758_s18  }
  0x32   : > { %193 = sbr.rel (%p875_p1) target bundleno = 135 (0x87), region = 28  ;;  %s195_s8 = sand.u32 (!%p875_p1), 1, %s742_s13  }
  0x33   : > { %s458_s12 = sshll.u32 (!%p875_p1), %s195_s8, 4  ;;  %s196_s22 = scalar_lea.sflag (!%p875_p1), [#allocation3], %s195_s8 }
  0x34   : > { %s199_s23 = scalar_lea.vmem (!%p875_p1), [#allocation2], %s458_s12 }
  0x37   : > { %712 = dma.done.wait (%p826_p6), %s196_s22, 256  }
  0x38   : > { %714 = vsyncadd (%p826_p6), %s196_s22, 4294967040  ;;  %s206_s28 = scalar_lea.sflag [#allocation6], %s195_s8  ;;  %s209_s5 = scalar_lea.vmem [#allocation5], %s458_s12 }
  0x39   : > { %716 = dma.done.wait (%p826_p6), %s206_s28, 256  }
  0x3a   : > { %718 = vsyncadd (%p826_p6), %s206_s28, 4294967040  ;;  %v249_v0 = vld [vmem:[%s199_s23] sm:$0xff]  ;;  %v250_v1 = vld [vmem:[%s199_s23 + $0x8] sm:$0xff]  ;;  %s233_s4 = sand.u32 1, %s730_s10   ;;  %v760_v16 = vmov 0.0   ;;  %p461_p6 = scmp.ge.s32.totalorder %s746_s14, 0 }
  0x3b   : > { %v251_v2 = vld [vmem:[%s209_s5] sm:$0xff]  ;;  %v252_v3 = vld [vmem:[%s209_s5 + $0x8] sm:$0xff]  ;;  %s460_s21 = sshll.u32 %s233_s4, 3 }
  0x3c   : > { %v253_v4 = vsub.f32 2.1, %v251_v2  ;;  %v281_v5 = vsub.f32 %v251_v2, %v249_v0  ;;  %v254_v6 = vsub.f32 2.1, %v252_v3  ;;  %v282_v7 = vsub.f32 %v252_v3, %v250_v1  ;;  %s910_s17 = scalar_lea.vmem [#allocation7], %s460_s21 }
  0x3d   : > { %248 = vst [vmem:[%s910_s17] sm:$0xff] %v760_v16 }
  0x3e   : > { %v255_v8 = vmul.f32 -0.6931472, %v253_v4  ;;  %v902_v9 = vand.u32 2147483647, %v281_v5  ;;  %v256_v10 = vmul.f32 -0.6931472, %v254_v6 }
  0x3f   : > { %v904_v11 = vand.u32 2147483647, %v282_v7 }
  0x40   : > { %v257_v12 = vmul.f32 1.442695, %v255_v8  ;;  %v285_v13 = vmax.f32 %v902_v9, 1e-30  ;;  %v259_v14 = vmul.f32 1.442695, %v256_v10 }
  0x41   : > { %v286_v15 = vmax.f32 %v904_v11, 1e-30  ;;  %vm309_vm0 = vcmp.lt.f32.partialorder %v902_v9, 0.5  ;;  %vm310_vm1 = vcmp.lt.f32.partialorder %v904_v11, 0.5 }
  0x42   : > { %563 = vpow2.f32 %v257_v12 }
  0x43   : > { %565 = vpow2.f32 %v259_v14 }
  0x44   : > { %567 = vlog2.f32 %v285_v13 }
  0x45   : > { %569 = vlog2.f32 %v286_v15 }
  0x48   : > { %v564_v17 = vpop.eup %563 }
  0x49   : > { %v566_v18 = vpop.eup %565  ;;  %v261_v19 = vadd.f32 1.0, %v564_v17 }
  0x4a   : > { %v568_v20 = vpop.eup %567  ;;  %v262_v21 = vadd.f32 1.0, %v566_v18 }
  0x4b   : > { %v570_v22 = vpop.eup %569  ;;  %571 = vrcp.f32 %v261_v19  ;;  %v288_v23 = vmul.f32 0.6931472, %v568_v20 }
  0x4c   : > { %573 = vrcp.f32 %v262_v21  ;;  %v290_v24 = vmul.f32 0.6931472, %v570_v22 }
  0x4d   : > { %575 = vlog2.f32 %v261_v19  ;;  %v291_v25 = vmul.f32 %v288_v23, %v253_v4 }
  0x4e   : > { %577 = vlog2.f32 %v262_v21  ;;  %v292_v26 = vmul.f32 %v290_v24, %v254_v6 }
  0x4f   : > { %v293_v27 = vmul.f32 1.442695, %v291_v25 }
  0x50   : > { %v295_v28 = vmul.f32 1.442695, %v292_v26 }
  0x51   : > { %v572_v29 = vpop.eup %571  ;;  %579 = vpow2.f32 %v293_v27 }
  0x52   : > { %v574_v30 = vpop.eup %573  ;;  %v265_v31 = vmul.f32 28.0, %v572_v29  ;;  %581 = vpow2.f32 %v295_v28 }
  0x53   : > { %v576_v32 = vpop.eup %575  ;;  %v266_v33 = vmul.f32 28.0, %v574_v30 }
  0x54   : > { %v578_v34 = vpop.eup %577  ;;  %v267_v35 = vmul.f32 %v265_v31, %v253_v4  ;;  %v274_v37 = vmul.f32 0.6931472, %v576_v32 }
  0x55   : > { %v268_v36 = vmul.f32 %v266_v33, %v254_v6  ;;  %v276_v39 = vmul.f32 0.6931472, %v578_v34 }
  0x56   : > { %v269_v38 = vmul.f32 %v564_v17, %v267_v35  ;;  %v277_v45 = vmul.f32 14.0, %v274_v37 }
  0x57   : > { %v580_v40 = vpop.eup %579  ;;  %v270_v41 = vmul.f32 %v566_v18, %v268_v36  ;;  %v278_v48 = vmul.f32 14.0, %v276_v39 }
  0x58   : > { %v582_v42 = vpop.eup %581  ;;  %v297_v43 = vadd.f32 1.0, %v580_v40  ;;  %v271_v44 = vmul.f32 0.5, %v269_v38  ;;  %v305_v50 = vmul.f32 %v902_v9, %v269_v38 }
  0x59   : > { %v298_v46 = vadd.f32 1.0, %v582_v42  ;;  %v272_v47 = vmul.f32 0.5, %v270_v41  ;;  %v306_v52 = vmul.f32 %v904_v11, %v270_v41 }
  0x5a   : > { %583 = vlog2.f32 %v297_v43  ;;  %v279_v49 = vsub.f32 %v271_v44, %v277_v45 }
  0x5b   : > { %585 = vlog2.f32 %v298_v46  ;;  %v280_v51 = vsub.f32 %v272_v47, %v278_v48 }
  0x5c   : > { %v307_v56 = vsub.f32 %v305_v50, %v279_v49 }
  0x5d   : > { %v308_v58 = vsub.f32 %v306_v52, %v280_v51 }
  0x60   : > { %v584_v53 = vpop.eup %583 }
  0x61   : > { %v586_v54 = vpop.eup %585  ;;  %v300_v55 = vmul.f32 0.6931472, %v584_v53 }
  0x62   : > { %v302_v57 = vmul.f32 0.6931472, %v586_v54  ;;  %317 = sbr.rel (%p461_p6) target bundleno = 108 (0x6c), region = 44 }
  0x63   : > { %v303_v59 = vmul.f32 14.0, %v300_v55 }
  0x64   : > { %v304_v60 = vmul.f32 14.0, %v302_v57 }
  0x65   : > { %v311_v61 = vsel %vm309_vm0, %v303_v59, %v307_v56 }
  0x66   : > { %v312_v62 = vsel %vm310_vm1, %v304_v60, %v308_v58 }
  0x67   : > { %v318_v63 = vld [vmem:[%s910_s17] sm:$0xff]  ;;  %v319_v0 = vadd.f32 %v312_v62, %v311_v61 }
  0x69   : > { %v320_v1 = vadd.f32 %v319_v0, %v318_v63 }
  0x6b   : > { %321 = vst [vmem:[%s910_s17] sm:$0xff] %v320_v1 }
  0x6c PF: > { %p462_p2 = scmp.ne.s32.totalorder %s746_s14, 0 }
  0x6e   : > { %325 = sbr.rel (%p462_p2) target bundleno = 120 (0x78), region = 48 }
  0x73   : > { %v326_v2 = vld [vmem:[%s910_s17] sm:$0xff]  ;;  %v327_v3 = vadd.f32 %v312_v62, %v311_v61 }
  0x75   : > { %v328_v4 = vadd.f32 %v327_v3, %v326_v2 }
  0x77   : > { %329 = vst [vmem:[%s910_s17] sm:$0xff] %v328_v4 }
  0x78 PF: > { %s464_s18 = sshll.u32 %s746_s14, 3  ;;  %s343_s6 = sshll.u32 %s910_s17, 4  ;;  %s344_s6 = int_to_ptr.vmem [resolvable:$true] %s343_s6 }
  0x79   : > { %s341_s30 = scalar_lea.hbm %s970_s2, %s464_s18  ;;  %s331_s3 = scalar_lea.sflag [#allocation4], %s233_s4 }
  0x7a   : > { %s345_s29 = sshll.u32 %s341_s30, 4  ;;  %s667_s14 = scalar_lea.hbm %s970_s2, 16  ;;  %s346_s29 = int_to_ptr.hbm [resolvable:$true] %s345_s29 }
  0x7b   : > { %s661_s7 = sshra.s32 %s346_s29, 4  ;;  %s662_s7 = int_to_ptr.hbm [resolvable:$true] %s661_s7 }
  0x7c   : > { %s663_s8 = scalar_lea.hbm %s662_s7, 8  ;;  %p668_p1 = scmp.lt.s32.totalorder %s662_s7, %s970_s2 }
  0x7d   : > { %p664_p8 = scmp.ne.s32.totalorder %s662_s7, %s663_s8  ;;  %p669_p7 = scmp.lt.s32.totalorder %s667_s14, %s663_s8 }
  0x7f   : > { %p665_p4 = pnand %p664_p8, %p840_p12  ;;  %p670_p9 = por %p669_p7, %p668_p1 }
  0x81   : > { %p666_p11 = pneg %p665_p4 }
  0x83   : > { %p671_p10 = pnand %p670_p9, %p666_p11 }
  0x85   : > { %674 = shalt.err (!%p671_p10)
}
  0x86   : > { %473 = dma.vmem_to_hbm [thread:$0]  (%p840_p12), %s344_s6, 128, %s346_s29, %s331_s3  }
  0x87 PF: > { %s357_s5 = sand.u32 1, %s726_s9   ;;  %p483_p3 = pnand %p450_p13, %p845_p0 }
  0x88   : > { %s358_s4 = scalar_lea.sflag [#allocation4], %s357_s5 }
  0x89   : > { %p484_p5 = pneg %p483_p3 }
  0x8b   : > { %720 = dma.done.wait (%p484_p5), %s358_s4, 128  }
  0x8c   : > { %722 = vsyncadd (%p484_p5), %s358_s4, 4294967168  ;;  %s21_s16 = sadd.s32 1, %s754_s16   ;;  %s977_s9 = smov %s730_s10 }
  0x8d   : > { %p18_p6 = scmp.ge.s32.totalorder %s21_s16, 4   ;;  %s978_s10 = smov %s734_s11 }
  0x8e   : > { %s979_s11 = smov %s834_s24  ;;  %s980_s12 = smov %s742_s13 }
  0x8f   : > { %s958_s13 = smov 0   ;;  %s981_s14 = smov %s750_s15 }
  0x90   : > { %s982_s15 = smov %s984_s19  ;;  %20 = sbr.rel (!%p18_p6) target bundleno = 9 (0x9), region = 98 }
  0x95   :  { %364 = vsyncpa [#allocation3], 1 }
  0x96   :  { %366 = vsyncpa [#allocation3 + $0x1], 1 }
  0x97   :  { %367 = vsyncpa [#allocation6], 1 }
  0x98   :  { %369 = vsyncpa [#allocation6 + $0x1], 1 }
  0x99   :  { %370 = vsyncpa [#allocation4], 1 }
  0x9a   :  { %372 = vsyncpa [#allocation4 + $0x1], 1 }

</bundles_post_ra>
